<compile_context>
chip_gen: v5e
topology: v5e:2x2
jax: 0.10.0
libtpu: 0.0.40
codegen_flags: <defaults>
</compile_context>

<pallas_src>
import jax
import jax.numpy as jnp
from jax import lax
from jax.experimental import pallas as pl
from jax.experimental.pallas import tpu as pltpu

LN_EPS = 1e-5
LANE = 128


def _round_up(n, m):
    return ((n + m - 1) // m) * m


def _vmem_capacity_bytes():
    try:
        return int(pltpu.get_tpu_info().vmem_capacity_bytes)
    except Exception:
        return 64 << 20  # conservative fallback (v7x per-TC size)


def _make_ffn_kernel(d_in, d_in_p):
    inv_n = 1.0 / float(d_in)

    def ffn_kernel(x_ref, w1_ref, b1_ref, w2_ref, ln_ref, o_ref):
        # x tile: (TM, d_in_p) in the stored matmul dtype (bf16 by default).
        x_in = x_ref[...]

        # h = ReLU(x @ W1^T + b1); W1 was pre-transposed in HBM to (d_in_p, d_hid_p).
        h = jnp.dot(x_in, w1_ref[...], preferred_element_type=jnp.float32)
        h = jnp.maximum(h + b1_ref[...], 0.0)

        # y = h @ W2^T; W2 was pre-transposed in HBM to (d_hid_p, d_in_p).
        y = jnp.dot(h.astype(w2_ref.dtype), w2_ref[...],
                    preferred_element_type=jnp.float32)

        ln = ln_ref[...]                      # (3, d_in_p) f32: [b2, gamma, beta]
        # dropout == identity (eval mode), then bias + residual add in f32.
        z = y + ln[0:1, :] + x_in.astype(jnp.float32)

        # LayerNorm over the real d_in features.  Invariant: the wrapper zero-pads x and the
        # weight pads, so padded columns of z are exactly zero; we still mask once so the
        # reductions can never pick up garbage.
        if d_in_p != d_in:
            col = lax.broadcasted_iota(jnp.int32, (1, d_in_p), 1)
            z = jnp.where(col < d_in, z, 0.0)

        # One-pass stats: two independent XLU reductions (E[z], E[z^2]).
        mean = jnp.sum(z, axis=-1, keepdims=True) * inv_n
        ex2 = jnp.sum(z * z, axis=-1, keepdims=True) * inv_n
        var = jnp.maximum(ex2 - mean * mean, 0.0)
        zn = (z - mean) * lax.rsqrt(var + LN_EPS)
        o_ref[...] = (zn * ln[1:2, :] + ln[2:3, :]).astype(o_ref.dtype)

    return ffn_kernel


def positionwise_ffn(x, w1, b1, w2, b2, gamma, beta, *, block_rows=None,
                     matmul_dtype=jnp.bfloat16):
    """Forward pass of PositionwiseFeedForwardUseConv (eval mode).

    x: (B, L, d_in); w1: (d_hid, d_in) [Conv1d k=1 weight, kernel dim squeezed];
    w2: (d_in, d_hid); b1: (d_hid,); b2/gamma/beta: (d_in,).
    matmul_dtype: dtype for the MXU operands (bf16 default); None -> keep input dtype.
    """
    B, L, d_in = x.shape
    d_hid = w1.shape[0]
    rows = B * L
    out_dtype = x.dtype

    # Lane-dense (multiple-of-128) feature dims; pads are no-ops for aligned production dims.
    d_in_p = _round_up(d_in, LANE)
    d_hid_p = _round_up(d_hid, LANE)

    mm_dtype = jnp.dtype(matmul_dtype) if matmul_dtype is not None else jnp.dtype(x.dtype)
    xb = mm_dtype.itemsize
    wb = mm_dtype.itemsize
    ob = jnp.dtype(out_dtype).itemsize

    # Generation-aware VMEM cap: leave 1/4 headroom for compiler scratch / bookkeeping.
    vmem_cap = (_vmem_capacity_bytes() * 3) // 4

    def _vmem_est(tm):
        return (2 * tm * d_in_p * xb              # x tiles (double-buffered)
                + 2 * tm * d_in_p * ob            # out tiles (double-buffered)
                + 2 * d_in_p * d_hid_p * wb       # W1t, W2t (single-buffered, resident)
                + (d_hid_p + 3 * d_in_p) * 4      # b1 + packed LN params (single-buffered)
                + tm * d_hid_p * 4                # h intermediate (f32)
                + 2 * tm * d_in_p * 4)            # z / LN temporaries (f32)

    if block_rows is None:
        base = 512 if vmem_cap >= (80 << 20) else 256  # bigger tiles on 128 MiB-VMEM chips
        if rows <= base:
            block_rows = max(8, _round_up(rows, 8))
        elif rows <= 2 * base:
            # two even row tiles: keeps both v7x TensorCores busy, minimal row padding.
            block_rows = _round_up((rows + 1) // 2, 8)
        else:
            block_rows = base
    # Shrink the row tile if the budget overshoots this chip's cap (weights stay resident).
    while block_rows > 8 and _vmem_est(block_rows) * 5 // 4 + (2 << 20) > vmem_cap:
        block_rows = max(8, _round_up(block_rows // 2, 8))

    n_tiles = pl.cdiv(rows, block_rows)
    rows_p = n_tiles * block_rows

    # Activations: cast once in the wrapper; pad only when genuinely ragged (zero pads keep the
    # masked-LayerNorm invariant: padded columns of z are exactly zero).
    x2 = x.reshape(rows, d_in)
    if x2.dtype != mm_dtype:
        x2 = x2.astype(mm_dtype)
    if rows_p != rows or d_in_p != d_in:
        x2 = jnp.pad(x2, ((0, rows_p - rows), (0, d_in_p - d_in)))

    # Pre-transpose (once, in HBM) so the kernel runs plain (M,K)x(K,N) MXU matmuls.
    w1t = jnp.pad(w1.T.astype(mm_dtype), ((0, d_in_p - d_in), (0, d_hid_p - d_hid)))
    w2t = jnp.pad(w2.T.astype(mm_dtype), ((0, d_hid_p - d_hid), (0, d_in_p - d_in)))
    b1p = jnp.pad(b1.astype(jnp.float32), (0, d_hid_p - d_hid)).reshape(1, d_hid_p)
    # b2 / gamma / beta packed into one tiny grid-invariant block (fewer DMA descriptors).
    ln_params = jnp.stack([
        jnp.pad(b2.astype(jnp.float32), (0, d_in_p - d_in)),
        jnp.pad(gamma.astype(jnp.float32), (0, d_in_p - d_in)),
        jnp.pad(beta.astype(jnp.float32), (0, d_in_p - d_in)),
    ])

    vmem_limit = int(min(max(_vmem_est(block_rows) * 5 // 4 + (2 << 20), 32 << 20), vmem_cap))

    cost = pl.CostEstimate(
        flops=4 * rows * d_in * d_hid,
        transcendentals=rows,  # one rsqrt per token
        bytes_accessed=(x2.size * xb + rows_p * d_in_p * ob
                        + (w1t.size + w2t.size) * wb),
    )

    kernel = _make_ffn_kernel(d_in, d_in_p)

    out = pl.pallas_call(
        kernel,
        out_shape=jax.ShapeDtypeStruct((rows_p, d_in_p), out_dtype),
        grid_spec=pltpu.PrefetchScalarGridSpec(
            num_scalar_prefetch=0,
            grid=(n_tiles,),
            in_specs=[
                pl.BlockSpec((block_rows, d_in_p), lambda i: (i, 0)),            # x tile
                pl.BlockSpec((d_in_p, d_hid_p), lambda i: (0, 0),                # W1^T (resident)
                             pipeline_mode=pl.Buffered(1)),
                pl.BlockSpec((1, d_hid_p), lambda i: (0, 0),                     # b1 (resident)
                             pipeline_mode=pl.Buffered(1)),
                pl.BlockSpec((d_hid_p, d_in_p), lambda i: (0, 0),                # W2^T (resident)
                             pipeline_mode=pl.Buffered(1)),
                pl.BlockSpec((3, d_in_p), lambda i: (0, 0),                      # b2/gamma/beta
                             pipeline_mode=pl.Buffered(1)),
            ],
            out_specs=pl.BlockSpec((block_rows, d_in_p), lambda i: (i, 0)),
        ),
        compiler_params=pltpu.CompilerParams(
            dimension_semantics=("parallel",),
            vmem_limit_bytes=vmem_limit,
        ),
        cost_estimate=cost,
    )(x2, w1t, b1p, w2t, ln_params)

    if rows_p != rows or d_in_p != d_in:
        out = out[:rows, :d_in]
    return out.reshape(B, L, d_in)


def reference(x, w1, b1, w2, b2, gamma, beta):
    # Pure-JAX reference matching the PyTorch module in eval mode.
    h = jnp.maximum(jnp.einsum("bld,hd->blh", x, w1) + b1, 0.0)
    y = jnp.einsum("blh,dh->bld", h, w2) + b2
    z = y + x
    mean = jnp.mean(z, axis=-1, keepdims=True)
    var = jnp.mean((z - mean) ** 2, axis=-1, keepdims=True)
    zn = (z - mean) / jnp.sqrt(var + LN_EPS)
    return zn * gamma + beta


def _make_inputs(key, B, L, d_in, d_hid):
    k_x, k_w1, k_b1, k_w2, k_b2 = jax.random.split(key, 5)
    x = jax.random.normal(k_x, (B, L, d_in), dtype=jnp.float32)
    # Conv1d(d_in, d_hid, 1) weight is (d_hid, d_in, 1) -> kernel dim squeezed
    w1 = jax.random.normal(k_w1, (d_hid, d_in), dtype=jnp.float32) * 0.1
    b1 = jax.random.normal(k_b1, (d_hid,), dtype=jnp.float32) * 0.1
    # Conv1d(d_hid, d_in, 1) weight is (d_in, d_hid, 1)
    w2 = jax.random.normal(k_w2, (d_in, d_hid), dtype=jnp.float32) * 0.1
    b2 = jax.random.normal(k_b2, (d_in,), dtype=jnp.float32) * 0.1
    gamma = jnp.ones((d_in,), dtype=jnp.float32)   # LayerNorm defaults
    beta = jnp.zeros((d_in,), dtype=jnp.float32)
    return x, w1, b1, w2, b2, gamma, beta


if __name__ == "__main__":
    # Small config (exercises lane padding: d_in 32->128, d_hid 64->128; single row tile).
    B, L, d_in, d_hid = 2, 16, 32, 64
    args = _make_inputs(jax.random.PRNGKey(0), B, L, d_in, d_hid)
    ref = reference(*args)

    # f32 matmul path: tight structural check.
    out_f32 = jax.block_until_ready(positionwise_ffn(*args, matmul_dtype=None))
    assert out_f32.shape == (B, L, d_in)
    assert jnp.allclose(out_f32, ref, atol=2e-4, rtol=2e-4), "mismatch vs reference (small f32)"

    # bf16 matmul path (default, full MXU rate): looser tolerance.
    out_bf16 = jax.block_until_ready(positionwise_ffn(*args))
    assert jnp.allclose(out_bf16, ref, atol=4e-2, rtol=4e-2), "mismatch vs reference (small bf16)"

    # Multi-tile config (lane-aligned d_in -> no column pad; multi-tile row grid + row padding).
    B2, L2, d_in2, d_hid2 = 2, 300, 128, 256
    args2 = _make_inputs(jax.random.PRNGKey(1), B2, L2, d_in2, d_hid2)
    ref2 = reference(*args2)
    out2 = jax.block_until_ready(positionwise_ffn(*args2))
    assert out2.shape == (B2, L2, d_in2)
    assert jnp.allclose(out2, ref2, atol=5e-2, rtol=5e-2), "mismatch vs reference (tiled bf16)"
    out2f = jax.block_until_ready(positionwise_ffn(*args2, matmul_dtype=None))
    assert jnp.allclose(out2f, ref2, atol=2e-4, rtol=2e-4), "mismatch vs reference (tiled f32)"

    print("KERNEL_OK")
</pallas_src>

<mosaic_0001>
module attributes {stable_mosaic.version = 11 : i64} {
  func.func @ffn_kernel(%arg0: i32, %arg1: memref<32x128xf32, #tpu.memory_space<vmem>>, %arg2: memref<128x128xf32, #tpu.memory_space<vmem>>, %arg3: memref<1x128xf32, #tpu.memory_space<vmem>>, %arg4: memref<128x128xf32, #tpu.memory_space<vmem>>, %arg5: memref<3x128xf32, #tpu.memory_space<vmem>>, %arg6: memref<32x128xf32, #tpu.memory_space<vmem>>) attributes {dimension_semantics = [#tpu.dimension_semantics<parallel>], iteration_bounds = array<i64: 1>, scalar_prefetch = 0 : i64, scratch_operands = 0 : i64, tpu.core_type = #tpu.core_type<tc>, window_params = [{transform_indices = @transform_0, window_bounds = array<i64: 32, 128>}, {pipeline_mode = #tpu.pipeline_mode<synchronous>, transform_indices = @transform_1, window_bounds = array<i64: 128, 128>}, {pipeline_mode = #tpu.pipeline_mode<synchronous>, transform_indices = @transform_2, window_bounds = array<i64: 1, 128>}, {pipeline_mode = #tpu.pipeline_mode<synchronous>, transform_indices = @transform_3, window_bounds = array<i64: 128, 128>}, {pipeline_mode = #tpu.pipeline_mode<synchronous>, transform_indices = @transform_4, window_bounds = array<i64: 3, 128>}, {transform_indices = @transform_5, window_bounds = array<i64: 32, 128>}]} {
    %c0 = arith.constant 0 : index
    %c0_0 = arith.constant 0 : index
    %0 = vector.load %arg1[%c0, %c0_0] : memref<32x128xf32, #tpu.memory_space<vmem>>, vector<32x128xf32>
    %c0_1 = arith.constant 0 : index
    %c0_2 = arith.constant 0 : index
    %1 = vector.load %arg2[%c0_1, %c0_2] : memref<128x128xf32, #tpu.memory_space<vmem>>, vector<128x128xf32>
    %cst = arith.constant dense<0.000000e+00> : vector<32x128xf32>
    %2 = tpu.matmul %0, %1, %cst {dimension_numbers = #tpu.dot_dimension_numbers<[1], [0], [0], [1], [0, 0, 1, 1], [], []>} : vector<32x128xf32>, vector<128x128xf32>, vector<32x128xf32> -> vector<32x128xf32>
    %c0_3 = arith.constant 0 : index
    %c0_4 = arith.constant 0 : index
    %3 = vector.load %arg3[%c0_3, %c0_4] : memref<1x128xf32, #tpu.memory_space<vmem>>, vector<1x128xf32>
    %4 = vector.broadcast %3 : vector<1x128xf32> to vector<32x128xf32>
    %5 = arith.addf %2, %4 : vector<32x128xf32>
    %cst_5 = arith.constant 0.000000e+00 : f32
    %6 = vector.broadcast %cst_5 : f32 to vector<32x128xf32>
    %7 = arith.maximumf %5, %6 : vector<32x128xf32>
    %c0_6 = arith.constant 0 : index
    %c0_7 = arith.constant 0 : index
    %8 = vector.load %arg4[%c0_6, %c0_7] : memref<128x128xf32, #tpu.memory_space<vmem>>, vector<128x128xf32>
    %cst_8 = arith.constant dense<0.000000e+00> : vector<32x128xf32>
    %9 = tpu.matmul %7, %8, %cst_8 {dimension_numbers = #tpu.dot_dimension_numbers<[1], [0], [0], [1], [0, 0, 1, 1], [], []>} : vector<32x128xf32>, vector<128x128xf32>, vector<32x128xf32> -> vector<32x128xf32>
    %c0_9 = arith.constant 0 : index
    %c0_10 = arith.constant 0 : index
    %10 = vector.load %arg5[%c0_9, %c0_10] : memref<3x128xf32, #tpu.memory_space<vmem>>, vector<3x128xf32>
    %11 = vector.extract_strided_slice %10 {offsets = [0, 0], sizes = [1, 128], strides = [1, 1]} : vector<3x128xf32> to vector<1x128xf32>
    %12 = vector.broadcast %11 : vector<1x128xf32> to vector<32x128xf32>
    %13 = arith.addf %9, %12 : vector<32x128xf32>
    %14 = arith.addf %13, %0 : vector<32x128xf32>
    %15 = tpu.iota {dimensions = array<i32: 1>} : vector<1x128xi32>
    %c32_i32 = arith.constant 32 : i32
    %16 = vector.broadcast %c32_i32 : i32 to vector<1x128xi32>
    %17 = arith.cmpi slt, %15, %16 : vector<1x128xi32>
    %cst_11 = arith.constant 0.000000e+00 : f32
    %18 = vector.shape_cast %17 : vector<1x128xi1> to vector<1x128xi1>
    %19 = vector.broadcast %18 : vector<1x128xi1> to vector<32x128xi1>
    %20 = vector.broadcast %cst_11 : f32 to vector<32x128xf32>
    %21 = arith.select %19, %14, %20 : vector<32x128xi1>, vector<32x128xf32>
    %cst_12 = arith.constant dense<0.000000e+00> : vector<32xf32>
    %22 = vector.multi_reduction <add>, %21, %cst_12 [1] : vector<32x128xf32> to vector<32xf32>
    %23 = vector.shape_cast %22 : vector<32xf32> to vector<32x1xf32>
    %cst_13 = arith.constant 3.125000e-02 : f32
    %24 = vector.broadcast %cst_13 : f32 to vector<32x1xf32>
    %25 = arith.mulf %23, %24 : vector<32x1xf32>
    %26 = arith.mulf %21, %21 : vector<32x128xf32>
    %cst_14 = arith.constant dense<0.000000e+00> : vector<32xf32>
    %27 = vector.multi_reduction <add>, %26, %cst_14 [1] : vector<32x128xf32> to vector<32xf32>
    %28 = vector.shape_cast %27 : vector<32xf32> to vector<32x1xf32>
    %cst_15 = arith.constant 3.125000e-02 : f32
    %29 = vector.broadcast %cst_15 : f32 to vector<32x1xf32>
    %30 = arith.mulf %28, %29 : vector<32x1xf32>
    %31 = arith.mulf %25, %25 : vector<32x1xf32>
    %32 = arith.subf %30, %31 : vector<32x1xf32>
    %cst_16 = arith.constant 0.000000e+00 : f32
    %33 = vector.broadcast %cst_16 : f32 to vector<32x1xf32>
    %34 = arith.maximumf %32, %33 : vector<32x1xf32>
    %35 = vector.broadcast %25 : vector<32x1xf32> to vector<32x128xf32>
    %36 = arith.subf %21, %35 : vector<32x128xf32>
    %cst_17 = arith.constant 9.99999974E-6 : f32
    %37 = vector.broadcast %cst_17 : f32 to vector<32x1xf32>
    %38 = arith.addf %34, %37 : vector<32x1xf32>
    %39 = math.rsqrt %38 : vector<32x1xf32>
    %40 = vector.broadcast %39 : vector<32x1xf32> to vector<32x128xf32>
    %41 = arith.mulf %36, %40 : vector<32x128xf32>
    %42 = vector.extract_strided_slice %10 {offsets = [1, 0], sizes = [1, 128], strides = [1, 1]} : vector<3x128xf32> to vector<1x128xf32>
    %43 = vector.broadcast %42 : vector<1x128xf32> to vector<32x128xf32>
    %44 = arith.mulf %41, %43 : vector<32x128xf32>
    %45 = vector.extract_strided_slice %10 {offsets = [2, 0], sizes = [1, 128], strides = [1, 1]} : vector<3x128xf32> to vector<1x128xf32>
    %46 = vector.broadcast %45 : vector<1x128xf32> to vector<32x128xf32>
    %47 = arith.addf %44, %46 : vector<32x128xf32>
    %c0_18 = arith.constant 0 : index
    %c0_19 = arith.constant 0 : index
    %48 = vector.load %arg6[%c0_18, %c0_19] : memref<32x128xf32, #tpu.memory_space<vmem>>, vector<32x128xf32>
    tpu.vector_store %arg6[%c0_18, %c0_19], %47 {strides = array<i32>} : memref<32x128xf32, #tpu.memory_space<vmem>>, vector<32x128xf32>,
    return
  }
  func.func @transform_0(%arg0: i32) -> (i32, i32) {
    %c0_i32 = arith.constant 0 : i32
    %c0_i32_0 = arith.constant 0 : i32
    return %arg0, %c0_i32 : i32, i32
  }
  func.func @transform_1(%arg0: i32) -> (i32, i32) {
    %c0_i32 = arith.constant 0 : i32
    %c0_i32_0 = arith.constant 0 : i32
    %c0_i32_1 = arith.constant 0 : i32
    return %c0_i32, %c0_i32_0 : i32, i32
  }
  func.func @transform_2(%arg0: i32) -> (i32, i32) {
    %c0_i32 = arith.constant 0 : i32
    %c0_i32_0 = arith.constant 0 : i32
    %c0_i32_1 = arith.constant 0 : i32
    return %c0_i32, %c0_i32_0 : i32, i32
  }
  func.func @transform_3(%arg0: i32) -> (i32, i32) {
    %c0_i32 = arith.constant 0 : i32
    %c0_i32_0 = arith.constant 0 : i32
    %c0_i32_1 = arith.constant 0 : i32
    return %c0_i32, %c0_i32_0 : i32, i32
  }
  func.func @transform_4(%arg0: i32) -> (i32, i32) {
    %c0_i32 = arith.constant 0 : i32
    %c0_i32_0 = arith.constant 0 : i32
    %c0_i32_1 = arith.constant 0 : i32
    return %c0_i32, %c0_i32_0 : i32, i32
  }
  func.func @transform_5(%arg0: i32) -> (i32, i32) {
    %c0_i32 = arith.constant 0 : i32
    %c0_i32_0 = arith.constant 0 : i32
    return %arg0, %c0_i32 : i32, i32
  }
}

</mosaic_0001>

<bundles_post_ra>
// kernel: tpu_custom_call.1
= control target key start
LH: loop header
LB: loop body
LE: loop exit
PB: predicated region body
PF: predicated region fallthrough
CT: control target
= control target key end

     0   :  { %10 = vsyncpa [#allocation3], 0  ;;  %s611_s0 = inlined_call_operand.hbm [shape: f32[32,128], index: 0, kind: input, shape index: {}]   ;;  %s612_s1 = inlined_call_operand.hbm [shape: f32[128,128], index: 1, kind: input, shape index: {}]   ;;  %s613_s2 = inlined_call_operand.vmem [shape: f32[1,128], index: 2, kind: input, shape index: {}]   ;;  %s614_s3 = inlined_call_operand.hbm [shape: f32[128,128], index: 3, kind: input, shape index: {}]   ;;  %s615_s4 = inlined_call_operand.hbm [shape: f32[3,128], index: 4, kind: input, shape index: {}]   ;;  %s616_s5 = inlined_call_operand.hbm [shape: f32[32,128], index: 5, kind: output, shape index: {}]  }
   0x1   :  { %11 = vsyncpa [#allocation6], 0 }
   0x2   :  { %12 = vsyncpa [#allocation9], 0 }
   0x3   :  { %13 = vsyncpa [#allocation4], 0  ;;  %s31_s20 = sshll.u32 %s612_s1, 4  ;;  %s502_s21 = smov [#allocation5]   ;;  %s32_s20 = int_to_ptr.hbm [resolvable:$true] %s31_s20 }
   0x4   :  { %s33_s22 = sshll.u32 %s502_s21, 4  ;;  %s18_s25 = sshll.u32 %s611_s0, 4  ;;  %s34_s22 = int_to_ptr.vmem [resolvable:$true] %s33_s22  ;;  %s19_s25 = int_to_ptr.hbm [resolvable:$true] %s18_s25 }
   0x5   :  { %s503_s26 = smov 128   ;;  %s504_s27 = smov 8  }
   0x6   :  { %39 = dma.hbm_to_vmem [thread:$0]  %s32_s20, 2048, %s34_s22, [#allocation6], %s503_s26, %s503_s26, %s504_s27  }
   0x7   :  { %s505_s28 = smov [#allocation2]   ;;  %s46_s1 = sshll.u32 %s614_s3, 4  ;;  %s47_s1 = int_to_ptr.hbm [resolvable:$true] %s46_s1 }
   0x8   :  { %s20_s29 = sshll.u32 %s505_s28, 4  ;;  %s60_s8 = sshll.u32 %s615_s4, 4  ;;  %s21_s29 = int_to_ptr.vmem [resolvable:$true] %s20_s29  ;;  %s61_s8 = int_to_ptr.hbm [resolvable:$true] %s60_s8 }
   0x9   :  { %26 = dma.hbm_to_vmem [thread:$0]  %s19_s25, 512, %s21_s29, [#allocation3], %s503_s26, %s503_s26, %s504_s27  }
   0xa   :  { %s506_s9 = smov [#allocation7]   ;;  %s507_s11 = smov [#allocation8]  }
   0xb   :  { %s48_s10 = sshll.u32 %s506_s9, 4  ;;  %s62_s3 = sshll.u32 %s507_s11, 4  ;;  %s49_s10 = int_to_ptr.vmem [resolvable:$true] %s48_s10  ;;  %s63_s3 = int_to_ptr.vmem [resolvable:$true] %s62_s3 }
   0xc   :  { %54 = dma.hbm_to_vmem [thread:$0]  %s47_s1, 2048, %s49_s10, [#allocation6], %s503_s26, %s503_s26, %s504_s27  }
   0xd   :  { %65 = dma.hbm_to_vmem [thread:$0]  %s61_s8, 64, %s63_s3, [#allocation9]  }
   0xe   :  { %494 = dma.done.wait [#allocation3], 512  }
   0xf   :  { %495 = vsyncadd [#allocation3], 4294966784 }
  0x10   :  { %496 = dma.done.wait [#allocation6], 4096  }
  0x11   :  { %497 = vsyncadd [#allocation6], 4294963200 }
  0x12   :  { %498 = dma.done.wait [#allocation9], 64  }
  0x13   :  { %499 = vsyncadd [#allocation9], 4294967232  ;;  %v101_v0 = vld [vmem:[#allocation5 + $0x78] sm:$0xff]  ;;  %v100_v1 = vld [vmem:[#allocation5 + $0x70] sm:$0xff]  ;;  %v190_v50 = vlaneseq  ;;  %s311_s16 = sshll.u32 %s616_s5, 4  ;;  %s312_s16 = int_to_ptr.hbm [resolvable:$true] %s311_s16 }
  0x14   :  { %106 = vmatpush.msra.mxu0 %v101_v0  ;;  %326 = vmatpush.msra.mxu2 %v101_v0  ;;  %v99_v2 = vld [vmem:[#allocation5 + $0x68] sm:$0xff]  ;;  %v98_v3 = vld [vmem:[#allocation5 + $0x60] sm:$0xff]  ;;  %v97_v4 = vld [vmem:[#allocation5 + $0x58] sm:$0xff] }
  0x15   :  { %v96_v5 = vld [vmem:[#allocation5 + $0x50] sm:$0xff]  ;;  %v154_v6 = vld [vmem:[#allocation7 + $0x78] sm:$0xff]  ;;  %v95_v8 = vld [vmem:[#allocation5 + $0x48] sm:$0xff]  ;;  %v191_v52 = vand.u32 127, %v190_v50 }
  0x16   :  { %107 = vmatpush.msra.mxu0 %v100_v1  ;;  %327 = vmatpush.msra.mxu2 %v100_v1  ;;  %v153_v7 = vld [vmem:[#allocation7 + $0x70] sm:$0xff]  ;;  %v152_v9 = vld [vmem:[#allocation7 + $0x68] sm:$0xff]  ;;  %v94_v10 = vld [vmem:[#allocation5 + $0x40] sm:$0xff] }
  0x17   :  { %157 = vmatpush.msra.mxu1 %v154_v6  ;;  %342 = vmatpush.msra.mxu3 %v154_v6  ;;  %v151_v11 = vld [vmem:[#allocation7 + $0x60] sm:$0xff]  ;;  %v93_v12 = vld [vmem:[#allocation5 + $0x38] sm:$0xff]  ;;  %v92_v14 = vld [vmem:[#allocation5 + $0x30] sm:$0xff]  ;;  %vm192_vm0 = vcmp.lt.s32.totalorder %v191_v52, 32 }
  0x18   :  { %108 = vmatpush.msra.mxu0 %v99_v2  ;;  %328 = vmatpush.msra.mxu2 %v99_v2  ;;  %v150_v13 = vld [vmem:[#allocation7 + $0x58] sm:$0xff]  ;;  %v149_v15 = vld [vmem:[#allocation7 + $0x50] sm:$0xff]  ;;  %v91_v16 = vld [vmem:[#allocation5 + $0x28] sm:$0xff] }
  0x19   :  { %158 = vmatpush.msra.mxu1 %v153_v7  ;;  %343 = vmatpush.msra.mxu3 %v153_v7  ;;  %v148_v17 = vld [vmem:[#allocation7 + $0x48] sm:$0xff]  ;;  %v90_v18 = vld [vmem:[#allocation5 + $0x20] sm:$0xff]  ;;  %v89_v20 = vld [vmem:[#allocation5 + $0x18] sm:$0xff] }
  0x1a   :  { %109 = vmatpush.msra.mxu0 %v98_v3  ;;  %329 = vmatpush.msra.mxu2 %v98_v3  ;;  %v147_v19 = vld [vmem:[#allocation7 + $0x40] sm:$0xff]  ;;  %v146_v21 = vld [vmem:[#allocation7 + $0x38] sm:$0xff]  ;;  %v88_v22 = vld [vmem:[#allocation5 + $0x10] sm:$0xff] }
  0x1b   :  { %159 = vmatpush.msra.mxu1 %v152_v9  ;;  %344 = vmatpush.msra.mxu3 %v152_v9  ;;  %v145_v23 = vld [vmem:[#allocation7 + $0x30] sm:$0xff]  ;;  %v87_v24 = vld [vmem:[#allocation5 + $0x8] sm:$0xff]  ;;  %v86_v26 = vld [vmem:[#allocation5] sm:$0xff] }
  0x1c   :  { %110 = vmatpush.msra.mxu0 %v97_v4  ;;  %330 = vmatpush.msra.mxu2 %v97_v4  ;;  %v144_v25 = vld [vmem:[#allocation7 + $0x28] sm:$0xff]  ;;  %v82_v27 = vld [vmem:[#allocation2] sm:$0xff]  ;;  %v560_v28 = vld [vmem:[#allocation2 + $0x10] sm:$0xff] }
  0x1d   :  { %160 = vmatpush.msra.mxu1 %v151_v11  ;;  %345 = vmatpush.msra.mxu3 %v151_v11  ;;  %v143_v29 = vld [vmem:[#allocation7 + $0x20] sm:$0xff]  ;;  %v142_v30 = vld [vmem:[#allocation7 + $0x18] sm:$0xff]  ;;  %v83_v31 = vld [vmem:[#allocation2 + $0x8] sm:$0xff] }
  0x1e   :  { %111 = vmatpush.msra.mxu0 %v96_v5  ;;  %331 = vmatpush.msra.mxu2 %v96_v5  ;;  %v85_v32 = vld [vmem:[#allocation2 + $0x18] sm:$0xff]  ;;  %v141_v33 = vld [vmem:[#allocation7 + $0x10] sm:$0xff]  ;;  %v140_v34 = vld [vmem:[#allocation7 + $0x8] sm:$0xff] }
  0x1f   :  { %161 = vmatpush.msra.mxu1 %v150_v13  ;;  %346 = vmatpush.msra.mxu3 %v150_v13  ;;  %v139_v35 = vld [vmem:[#allocation7] sm:$0xff] }
  0x20   :  { %112 = vmatpush.msra.mxu0 %v95_v8  ;;  %332 = vmatpush.msra.mxu2 %v95_v8  ;;  %v365_v36 = vld [vmem:[%s613_s2] ss:$0 sm:$0xff]  ;;  %s508_s2 = smov [#allocation10]  }
  0x21   :  { %162 = vmatpush.msra.mxu1 %v149_v15  ;;  %347 = vmatpush.msra.mxu3 %v149_v15  ;;  %v566_v49 = vld [vmem:[#allocation8] sm:$0x7]  ;;  %s309_s13 = sshll.u32 %s508_s2, 4  ;;  %s310_s13 = int_to_ptr.vmem [resolvable:$true] %s309_s13 }
  0x22   :  { %113 = vmatpush.msra.mxu0 %v94_v10  ;;  %333 = vmatpush.msra.mxu2 %v94_v10  ;;  %v156_v51 = vperm.slane %v566_v49, 0 }
  0x23   :  { %163 = vmatpush.msra.mxu1 %v148_v17  ;;  %348 = vmatpush.msra.mxu3 %v148_v17 }
  0x24   :  { %114 = vmatpush.msra.mxu0 %v93_v12  ;;  %334 = vmatpush.msra.mxu2 %v93_v12 }
  0x25   :  { %164 = vmatpush.msra.mxu1 %v147_v19  ;;  %349 = vmatpush.msra.mxu3 %v147_v19 }
  0x26   :  { %115 = vmatpush.msra.mxu0 %v92_v14  ;;  %335 = vmatpush.msra.mxu2 %v92_v14 }
  0x27   :  { %165 = vmatpush.msra.mxu1 %v146_v21  ;;  %350 = vmatpush.msra.mxu3 %v146_v21 }
  0x28   :  { %116 = vmatpush.msra.mxu0 %v91_v16  ;;  %336 = vmatpush.msra.mxu2 %v91_v16 }
  0x29   :  { %166 = vmatpush.msra.mxu1 %v145_v23  ;;  %351 = vmatpush.msra.mxu3 %v145_v23 }
  0x2a   :  { %117 = vmatpush.msra.mxu0 %v90_v18  ;;  %337 = vmatpush.msra.mxu2 %v90_v18 }
  0x2b   :  { %167 = vmatpush.msra.mxu1 %v144_v25  ;;  %352 = vmatpush.msra.mxu3 %v144_v25 }
  0x2c   :  { %118 = vmatpush.msra.mxu0 %v89_v20  ;;  %338 = vmatpush.msra.mxu2 %v89_v20 }
  0x2d   :  { %168 = vmatpush.msra.mxu1 %v143_v29  ;;  %353 = vmatpush.msra.mxu3 %v143_v29 }
  0x2e   :  { %119 = vmatpush.msra.mxu0 %v88_v22  ;;  %339 = vmatpush.msra.mxu2 %v88_v22 }
  0x2f   :  { %169 = vmatpush.msra.mxu1 %v142_v30  ;;  %354 = vmatpush.msra.mxu3 %v142_v30 }
  0x30   :  { %120 = vmatpush.msra.mxu0 %v87_v24  ;;  %340 = vmatpush.msra.mxu2 %v87_v24 }
  0x31   :  { %170 = vmatpush.msra.mxu1 %v141_v33  ;;  %355 = vmatpush.msra.mxu3 %v141_v33 }
  0x32   :  { %121 = vmatpush.msra.mxu0 %v86_v26  ;;  %341 = vmatpush.msra.mxu2 %v86_v26 }
  0x33   :  { %122 = vmatmul.f32.vlgmr.msra.gmra.mxu0 %v82_v27  ;;  %128 = vmatmul.f32.vlgmr.msra.gmra.mxu2 %v560_v28 }
  0x34   :  { %171 = vmatpush.msra.mxu1 %v140_v34  ;;  %356 = vmatpush.msra.mxu3 %v140_v34 }
  0x36   :  { %172 = vmatpush.msra.mxu1 %v139_v35  ;;  %357 = vmatpush.msra.mxu3 %v139_v35 }
  0x3b   :  { %125 = vmatmul.f32.gmra.mxu0 %v83_v31  ;;  %131 = vmatmul.f32.gmra.mxu2 %v85_v32 }
  0xb0   :  { %v123_v37 = vpop.f32.mrf.mxu0 }
  0xb1   :  { %v124_v38 = vadd.f32 %v365_v36, %v123_v37 }
  0xb3   :  { %v135_v39 = vmax.f32 %v124_v38, 0.0 }
  0xb5   :  { %173 = vmatmul.f32.vlgmr.msra.gmra.mxu1 %v135_v39 }
  0xb6   :  { %v129_v40 = vpop.f32.mrf.mxu2 }
  0xb7   :  { %v130_v41 = vadd.f32 %v365_v36, %v129_v40 }
  0xb8   :  { %v126_v42 = vpop.f32.mrf.mxu0 }
  0xb9   :  { %v137_v43 = vmax.f32 %v130_v41, 0.0  ;;  %v127_v44 = vadd.f32 %v365_v36, %v126_v42  ;;  %v291_v42 = vperm.slane %v566_v49, 1 }
  0xbb   :  { %v136_v45 = vmax.f32 %v127_v44, 0.0  ;;  %179 = vmatmul.f32.vlgmr.msra.gmra.mxu3 %v137_v43 }
  0xbd   :  { %176 = vmatmul.f32.gmra.mxu1 %v136_v45  ;;  %v296_v45 = vperm.slane %v566_v49, 2 }
  0xbe   :  { %v132_v46 = vpop.f32.mrf.mxu2 }
  0xbf   :  { %v133_v47 = vadd.f32 %v365_v36, %v132_v46 }
  0xc1   :  { %v138_v48 = vmax.f32 %v133_v47, 0.0 }
  0xc3   :  { %182 = vmatmul.f32.gmra.mxu3 %v138_v48 }
 0x132   :  { %v174_v53 = vpop.f32.mrf.mxu1 }
 0x133   :  { %v175_v54 = vadd.f32 %v174_v53, %v156_v51 }
 0x135   :  { %v186_v55 = vadd.f32 %v175_v54, %v82_v27 }
 0x137   :  { %v570_v56 = vsel %vm192_vm0, %v186_v55, 0.0 }
 0x138   :  { %199 = vadd.xlane.f32.xlu0 %v570_v56  ;;  %v211_v57 = vmul.f32 %v570_v56, %v570_v56 }
 0x13a   :  { %v177_v58 = vpop.f32.mrf.mxu1  ;;  %215 = vadd.xlane.f32.xlu2 %v211_v57 }
 0x13b   :  { %v178_v59 = vadd.f32 %v177_v58, %v156_v51 }
 0x13d   :  { %v187_v60 = vadd.f32 %v178_v59, %v83_v31 }
 0x13e   :  { %v180_v61 = vpop.f32.mrf.mxu3 }
 0x13f   :  { %v181_v62 = vadd.f32 %v180_v61, %v156_v51  ;;  %v576_v63 = vsel %vm192_vm0, %v187_v60, 0.0 }
 0x140   :  { %201 = vadd.xlane.f32.xlu0 %v576_v63  ;;  %v212_v0 = vmul.f32 %v576_v63, %v576_v63 }
 0x141   :  { %v188_v1 = vadd.f32 %v181_v62, %v560_v28 }
 0x142   :  { %217 = vadd.xlane.f32.xlu2 %v212_v0 }
 0x143   :  { %v583_v2 = vsel %vm192_vm0, %v188_v1, 0.0 }
 0x144   :  { %203 = vadd.xlane.f32.xlu1 %v583_v2  ;;  %v213_v4 = vmul.f32 %v583_v2, %v583_v2 }
 0x146   :  { %v183_v3 = vpop.f32.mrf.mxu3 }
 0x147   :  { %v184_v5 = vadd.f32 %v183_v3, %v156_v51 }
 0x148   :  { %219 = vadd.xlane.f32.xlu0 %v213_v4 }
 0x149   :  { %v189_v6 = vadd.f32 %v184_v5, %v85_v32 }
 0x14b   :  { %v589_v7 = vsel %vm192_vm0, %v189_v6, 0.0 }
 0x14c   :  { %205 = vadd.xlane.f32.xlu1 %v589_v7  ;;  %v214_v8 = vmul.f32 %v589_v7, %v589_v7 }
 0x154   :  { %221 = vadd.xlane.f32.xlu1 %v214_v8 }
 0x1ab   :  { %v200_v9 = vpop.xlane.xlu0 %199 }
 0x1ac   :  { %v207_v10 = vmul.f32 0.03125, %v200_v9 }
 0x1ad   :  { %v216_v11 = vpop.xlane.xlu2 %215 }
 0x1ae   :  { %v227_v12 = vmul.f32 %v207_v10, %v207_v10  ;;  %v223_v13 = vmul.f32 0.03125, %v216_v11  ;;  %v239_v43 = vsub.f32 %v570_v56, %v207_v10 }
 0x1b0   :  { %v231_v14 = vsub.f32 %v223_v13, %v227_v12 }
 0x1b2   :  { %v235_v15 = vmax.f32 %v231_v14, 0.0 }
 0x1b3   :  { %v202_v16 = vpop.xlane.xlu0 %201 }
 0x1b4   :  { %v243_v17 = vadd.f32 1e-05, %v235_v15  ;;  %v208_v18 = vmul.f32 0.03125, %v202_v16 }
 0x1b5   :  { %v218_v19 = vpop.xlane.xlu2 %217 }
 0x1b6   :  { %366 = vrsqrt.f32 %v243_v17  ;;  %v228_v20 = vmul.f32 %v208_v18, %v208_v18  ;;  %v224_v21 = vmul.f32 0.03125, %v218_v19  ;;  %vm253_vm1 = vweird.f32 %v243_v17 }
 0x1b7   :  { %v204_v22 = vpop.xlane.xlu1 %203  ;;  %v240_v49 = vsub.f32 %v576_v63, %v208_v18 }
 0x1b8   :  { %v594_v23 = vmul.f32 0.03125, %v204_v22  ;;  %v232_v24 = vsub.f32 %v224_v21, %v228_v20 }
 0x1ba   :  { %v236_v25 = vmax.f32 %v232_v24, 0.0  ;;  %v229_v28 = vmul.f32 %v594_v23, %v594_v23  ;;  %v241_v9 = vsub.f32 %v583_v2, %v594_v23 }
 0x1bb   :  { %v220_v26 = vpop.xlane.xlu0 %219 }
 0x1bc   :  { %v367_v27 = vpop.eup %366  ;;  %v225_v29 = vmul.f32 0.03125, %v220_v26  ;;  %v244_v31 = vadd.f32 1e-05, %v236_v25 }
 0x1bd   :  { %v248_v30 = vmul.f32 %v367_v27, %v243_v17  ;;  %vm254_vm2 = vweird.f32 %v367_v27 }
 0x1be   :  { %v233_v32 = vsub.f32 %v225_v29, %v229_v28  ;;  %368 = vrsqrt.f32 %v244_v31  ;;  %vm255_vm3 = vmor %vm253_vm1, %vm254_vm2  ;;  %vm263_vm4 = vweird.f32 %v244_v31 }
 0x1bf   :  { %v249_v33 = vmul.f32 %v367_v27, %v248_v30  ;;  %v206_v34 = vpop.xlane.xlu1 %205 }
 0x1c0   :  { %v237_v35 = vmax.f32 %v233_v32, 0.0  ;;  %v210_v39 = vmul.f32 0.03125, %v206_v34 }
 0x1c1   :  { %v250_v36 = vmul.f32 0.5, %v249_v33 }
 0x1c2   :  { %v245_v37 = vadd.f32 1e-05, %v237_v35  ;;  %v230_v51 = vmul.f32 %v210_v39, %v210_v39  ;;  %v242_v20 = vsub.f32 %v589_v7, %v210_v39 }
 0x1c3   :  { %v251_v38 = vsub.f32 1.5, %v250_v36 }
 0x1c4   :  { %370 = vrsqrt.f32 %v245_v37  ;;  %v369_v40 = vpop.eup %368  ;;  %vm273_vm8 = vweird.f32 %v245_v37 }
 0x1c5   :  { %v252_v41 = vmul.f32 %v367_v27, %v251_v38  ;;  %v258_v44 = vmul.f32 %v369_v40, %v244_v31  ;;  %vm264_vm5 = vweird.f32 %v369_v40 }
 0x1c6   :  { %vm265_vm6 = vmor %vm263_vm4, %vm264_vm5 }
 0x1c7   :  { %v256_v46 = vsel %vm255_vm3, %v367_v27, %v252_v41  ;;  %v222_v47 = vpop.xlane.xlu1 %221  ;;  %v259_v50 = vmul.f32 %v369_v40, %v258_v44 }
 0x1c8   :  { %v287_v48 = vmul.f32 %v256_v46, %v239_v43  ;;  %v226_v52 = vmul.f32 0.03125, %v222_v47 }
 0x1c9   :  { %v260_v55 = vmul.f32 0.5, %v259_v50 }
 0x1ca   :  { %v371_v53 = vpop.eup %370  ;;  %v292_v54 = vmul.f32 %v291_v42, %v287_v48  ;;  %v234_v57 = vsub.f32 %v226_v52, %v230_v51 }
 0x1cb   :  { %v268_v58 = vmul.f32 %v371_v53, %v245_v37  ;;  %v261_v59 = vsub.f32 1.5, %v260_v55  ;;  %vm274_vm7 = vweird.f32 %v371_v53 }
 0x1cc   :  { %v238_v60 = vmax.f32 %v234_v57, 0.0  ;;  %v297_v56 = vadd.f32 %v296_v45, %v292_v54  ;;  %vm275_vm9 = vmor %vm273_vm8, %vm274_vm7 }
 0x1cd   :  { %v269_v61 = vmul.f32 %v371_v53, %v268_v58  ;;  %v262_v62 = vmul.f32 %v369_v40, %v261_v59 }
 0x1ce   :  { %v246_v0 = vadd.f32 1e-05, %v238_v60  ;;  %301 = vst [vmem:[#allocation10] sm:$0xff] %v297_v56 }
 0x1cf   :  { %v270_v1 = vmul.f32 0.5, %v269_v61  ;;  %v266_v3 = vsel %vm265_vm6, %v369_v40, %v262_v62 }
 0x1d0   :  { %372 = vrsqrt.f32 %v246_v0  ;;  %v288_v4 = vmul.f32 %v266_v3, %v240_v49  ;;  %vm283_vm11 = vweird.f32 %v246_v0 }
 0x1d1   :  { %v271_v5 = vsub.f32 1.5, %v270_v1 }
 0x1d2   :  { %v293_v6 = vmul.f32 %v291_v42, %v288_v4 }
 0x1d3   :  { %v272_v8 = vmul.f32 %v371_v53, %v271_v5 }
 0x1d4   :  { %v298_v11 = vadd.f32 %v296_v45, %v293_v6 }
 0x1d5   :  { %v276_v10 = vsel %vm275_vm9, %v371_v53, %v272_v8 }
 0x1d6   :  { %v373_v12 = vpop.eup %372  ;;  %v289_v13 = vmul.f32 %v276_v10, %v241_v9  ;;  %302 = vst [vmem:[#allocation10 + $0x8] sm:$0xff] %v298_v11 }
 0x1d7   :  { %v278_v14 = vmul.f32 %v373_v12, %v246_v0  ;;  %vm284_vm10 = vweird.f32 %v373_v12 }
 0x1d8   :  { %v294_v63 = vmul.f32 %v291_v42, %v289_v13  ;;  %vm285_vm12 = vmor %vm283_vm11, %vm284_vm10 }
 0x1d9   :  { %v279_v15 = vmul.f32 %v373_v12, %v278_v14 }
 0x1da   :  { %v299_v16 = vadd.f32 %v296_v45, %v294_v63 }
 0x1db   :  { %v280_v17 = vmul.f32 0.5, %v279_v15 }
 0x1dc   :  { %303 = vst [vmem:[#allocation10 + $0x10] sm:$0xff] %v299_v16 }
 0x1dd   :  { %v281_v18 = vsub.f32 1.5, %v280_v17 }
 0x1df   :  { %v282_v19 = vmul.f32 %v373_v12, %v281_v18 }
 0x1e1   :  { %v286_v2 = vsel %vm285_vm12, %v373_v12, %v282_v19 }
 0x1e2   :  { %v290_v21 = vmul.f32 %v286_v2, %v242_v20 }
 0x1e4   :  { %v295_v22 = vmul.f32 %v291_v42, %v290_v21 }
 0x1e6   :  { %v300_v23 = vadd.f32 %v296_v45, %v295_v22 }
 0x1e8   :  { %304 = vst [vmem:[#allocation10 + $0x18] sm:$0xff] %v300_v23 }
 0x1e9   :  { %317 = dma.vmem_to_hbm [thread:$0]  %s310_s13, 512, %s312_s16, [#allocation4], %s503_s26, %s503_s26, %s504_s27  }
 0x1ea   :  { %500 = dma.done.wait [#allocation4], 512  }
 0x1eb   :  { %501 = vsyncadd [#allocation4], 4294966784 }
 0x1ec   :  { %322 = vsyncpa [#allocation3], 1 }
 0x1ed   :  { %323 = vsyncpa [#allocation6], 1 }
 0x1ee   :  { %324 = vsyncpa [#allocation9], 1 }
 0x1ef   :  { %325 = vsyncpa [#allocation4], 1 }

</bundles_post_ra>
